<compile_context>
chip_gen: v6e
topology: v6e:2x2x1
jax: 0.10.0
libtpu: 0.0.40
codegen_flags: <defaults>
</compile_context>

<pallas_src>
from functools import partial

import jax
import jax.numpy as jnp
from jax.experimental import pallas as pl
from jax.experimental.pallas import tpu as pltpu


def resnet_kernel(x_ref, w1_ref, b1_ref, w2_ref, b2_ref,
                  w3_ref, b3_ref, w4_ref, b4_ref,
                  wo_ref, bo_ref, out_ref, s_ref, *, dim, m):
    """Feature-major fused forward.

    x_ref:  (dim, tb)   batch tile on the lane axis
    wN_ref: (out, in)   PyTorch-layout weights
    bN_ref: (out, 1)    biases, broadcast over lanes
    out_ref:(o, tb)
    s_ref:  (m, tb)     VMEM scratch for the zero-padded skip connection
    """
    x = x_ref[...].astype(jnp.float32)                     # (dim, tb)
    tb = x.shape[1]

    # --- activation masks: built ONCE per grid step, reused by all 4 calls ---
    q = m // 4
    row = jax.lax.broadcasted_iota(jnp.int32, (m, tb), dimension=0)
    in_q0 = row < q
    in_q1 = row < 2 * q
    in_q2 = row < 3 * q

    def act(y):
        # piecewise over feature quarters: [id | x^2 | sin(x) | exp(-x^2/(2*0.05^2))]
        sq = y * y
        sn = jnp.sin(y)
        gauss = jnp.exp(sq * (-200.0))                     # -1/(2*0.05^2) = -200
        return jnp.where(in_q0, y,
               jnp.where(in_q1, sq,
               jnp.where(in_q2, sn, gauss)))

    # --- s = x zero-padded from dim to m features (== x @ Ix in the module) ---
    s_ref[...] = jnp.zeros_like(s_ref)
    s_ref[0:dim, :] = x
    s = s_ref[...]

    # --- block 1 ---
    y = jnp.dot(w1_ref[...], x, preferred_element_type=jnp.float32) + b1_ref[...]
    y = act(y)
    y = jnp.dot(w2_ref[...], y, preferred_element_type=jnp.float32) + b2_ref[...]
    y = act(y) + s

    # --- block 2 ---
    s = y
    y = jnp.dot(w3_ref[...], y, preferred_element_type=jnp.float32) + b3_ref[...]
    y = act(y)
    y = jnp.dot(w4_ref[...], y, preferred_element_type=jnp.float32) + b4_ref[...]
    y = act(y) + s

    # --- output layer ---
    out = jnp.dot(wo_ref[...], y, preferred_element_type=jnp.float32) + bo_ref[...]
    out_ref[...] = out.astype(out_ref.dtype)


def resnet_forward(x, params, *, tile_b=128):
    """x: [N, dim] (PyTorch nn.Linear input layout). Returns [N, o]."""
    N, dim = x.shape
    m = params["w1"].shape[0]
    o = params["wo"].shape[0]

    # Transpose to feature-major so the batch rides the 128-lane axis; pad the
    # batch up to a multiple of the lane tile.  (Layout plumbing only.)
    xt = x.T                                               # (dim, N)
    n_tiles = pl.cdiv(N, tile_b)
    Np = n_tiles * tile_b
    if Np != N:
        xt = jnp.pad(xt, ((0, 0), (0, Np - N)))

    def full(shape):
        return pl.BlockSpec(shape, lambda i: (0, 0))

    in_specs = [
        pl.BlockSpec((dim, tile_b), lambda i: (0, i)),     # x tile (lane-dense)
        full((m, dim)), full((m, 1)),                      # fc1
        full((m, m)), full((m, 1)),                        # fc2
        full((m, m)), full((m, 1)),                        # fc3
        full((m, m)), full((m, 1)),                        # fc4
        full((o, m)), full((o, 1)),                        # outlayer
    ]
    out_spec = pl.BlockSpec((o, tile_b), lambda i: (0, i))

    weight_bytes = 4 * (m * dim + 3 * m * m + o * m + 4 * m + o)
    cost = pl.CostEstimate(
        flops=2 * Np * (dim * m + 3 * m * m + m * o) + 12 * Np * m,
        transcendentals=4 * 2 * Np * m,                    # sin + exp per activation call
        bytes_accessed=weight_bytes + 4 * Np * (dim + o),
    )

    out_t = pl.pallas_call(
        partial(resnet_kernel, dim=dim, m=m),
        out_shape=jax.ShapeDtypeStruct((o, Np), x.dtype),
        grid=(n_tiles,),
        in_specs=in_specs,
        out_specs=out_spec,
        scratch_shapes=[pltpu.VMEM((m, tile_b), jnp.float32)],
        compiler_params=pltpu.CompilerParams(dimension_semantics=("parallel",)),
        cost_estimate=cost,
    )(xt,
      params["w1"], params["b1"], params["w2"], params["b2"],
      params["w3"], params["b3"], params["w4"], params["b4"],
      params["wo"], params["bo"])

    return out_t[:, :N].T                                  # (N, o)


def init_params(key, dim, m, o):
    """Deterministic synthetic parameters; weights in PyTorch [out, in] layout."""
    ks = jax.random.split(key, 10)

    def lin(kw, kb, fan_in, fan_out):
        bound = 1.0 / jnp.sqrt(jnp.float32(fan_in))
        w = jax.random.uniform(kw, (fan_out, fan_in), jnp.float32, -bound, bound)
        b = jax.random.uniform(kb, (fan_out, 1), jnp.float32, -bound, bound)
        return w, b

    w1, b1 = lin(ks[0], ks[1], dim, m)
    w2, b2 = lin(ks[2], ks[3], m, m)
    w3, b3 = lin(ks[4], ks[5], m, m)
    w4, b4 = lin(ks[6], ks[7], m, m)
    wo, bo = lin(ks[8], ks[9], m, o)
    return dict(w1=w1, b1=b1, w2=w2, b2=b2, w3=w3, b3=b3, w4=w4, b4=b4,
                wo=wo, bo=bo)


def resnet_reference(x, p):
    """Pure-jnp reference mirroring the PyTorch forward (batch-major)."""
    m, dim = p["w1"].shape
    q = m // 4

    def act(y):
        return jnp.concatenate([
            y[:, 0:q],
            y[:, q:2 * q] ** 2,
            jnp.sin(y[:, 2 * q:3 * q]),
            jnp.exp(-y[:, 3 * q:m] ** 2 / (2 * 0.05 ** 2)),
        ], axis=1)

    Ix = jnp.zeros((dim, m), jnp.float32).at[jnp.arange(dim), jnp.arange(dim)].set(1.0)
    s = x @ Ix
    y = act(x @ p["w1"].T + p["b1"].T)
    y = act(y @ p["w2"].T + p["b2"].T) + s
    s = y
    y = act(y @ p["w3"].T + p["b3"].T)
    y = act(y @ p["w4"].T + p["b4"].T) + s
    return y @ p["wo"].T + p["bo"].T


if __name__ == "__main__":
    key = jax.random.PRNGKey(0)
    k_x, k_p = jax.random.split(key)

    # Small shapes consistent with the module (m divisible by 4); batch is a
    # couple of 128-lane tiles so the grid has multiple (pipelined) steps.
    batch, dim, m, o = 256, 4, 32, 4
    x = jax.random.normal(k_x, (batch, dim), jnp.float32)
    params = init_params(k_p, dim, m, o)

    out = resnet_forward(x, params, tile_b=128)
    out = jax.block_until_ready(out)

    ref = resnet_reference(x, params)
    assert out.shape == (batch, o)
    assert jnp.allclose(out, ref, atol=1e-4, rtol=1e-4), "mismatch vs reference"

    print("KERNEL_OK")
</pallas_src>

<mosaic_0001>
module attributes {stable_mosaic.version = 11 : i64} {
  func.func @resnet_kernel(%arg0: i32, %arg1: memref<4x128xf32, #tpu.memory_space<vmem>>, %arg2: memref<32x4xf32, #tpu.memory_space<vmem>>, %arg3: memref<32x1xf32, #tpu.memory_space<vmem>>, %arg4: memref<32x32xf32, #tpu.memory_space<vmem>>, %arg5: memref<32x1xf32, #tpu.memory_space<vmem>>, %arg6: memref<32x32xf32, #tpu.memory_space<vmem>>, %arg7: memref<32x1xf32, #tpu.memory_space<vmem>>, %arg8: memref<32x32xf32, #tpu.memory_space<vmem>>, %arg9: memref<32x1xf32, #tpu.memory_space<vmem>>, %arg10: memref<4x32xf32, #tpu.memory_space<vmem>>, %arg11: memref<4x1xf32, #tpu.memory_space<vmem>>, %arg12: memref<4x128xf32, #tpu.memory_space<vmem>>, %arg13: memref<32x128xf32, #tpu.memory_space<vmem>>) attributes {dimension_semantics = [#tpu.dimension_semantics<parallel>], iteration_bounds = array<i64: 2>, scalar_prefetch = 0 : i64, scratch_operands = 1 : i64, tpu.core_type = #tpu.core_type<tc>, window_params = [{transform_indices = @transform_0, window_bounds = array<i64: 4, 128>}, {pipeline_mode = #tpu.pipeline_mode<synchronous>, transform_indices = @transform_1, window_bounds = array<i64: 32, 4>}, {pipeline_mode = #tpu.pipeline_mode<synchronous>, transform_indices = @transform_2, window_bounds = array<i64: 32, 1>}, {pipeline_mode = #tpu.pipeline_mode<synchronous>, transform_indices = @transform_3, window_bounds = array<i64: 32, 32>}, {pipeline_mode = #tpu.pipeline_mode<synchronous>, transform_indices = @transform_4, window_bounds = array<i64: 32, 1>}, {pipeline_mode = #tpu.pipeline_mode<synchronous>, transform_indices = @transform_5, window_bounds = array<i64: 32, 32>}, {pipeline_mode = #tpu.pipeline_mode<synchronous>, transform_indices = @transform_6, window_bounds = array<i64: 32, 1>}, {pipeline_mode = #tpu.pipeline_mode<synchronous>, transform_indices = @transform_7, window_bounds = array<i64: 32, 32>}, {pipeline_mode = #tpu.pipeline_mode<synchronous>, transform_indices = @transform_8, window_bounds = array<i64: 32, 1>}, {pipeline_mode = #tpu.pipeline_mode<synchronous>, transform_indices = @transform_9, window_bounds = array<i64: 4, 32>}, {pipeline_mode = #tpu.pipeline_mode<synchronous>, transform_indices = @transform_10, window_bounds = array<i64: 4, 1>}, {transform_indices = @transform_11, window_bounds = array<i64: 4, 128>}]} {
    %c0 = arith.constant 0 : index
    %c0_0 = arith.constant 0 : index
    %0 = vector.load %arg1[%c0, %c0_0] : memref<4x128xf32, #tpu.memory_space<vmem>>, vector<4x128xf32>
    %1 = tpu.iota {dimensions = array<i32: 0>} : vector<32x128xi32>
    %c8_i32 = arith.constant 8 : i32
    %2 = vector.broadcast %c8_i32 : i32 to vector<32x128xi32>
    %3 = arith.cmpi slt, %1, %2 : vector<32x128xi32>
    %c16_i32 = arith.constant 16 : i32
    %4 = vector.broadcast %c16_i32 : i32 to vector<32x128xi32>
    %5 = arith.cmpi slt, %1, %4 : vector<32x128xi32>
    %c24_i32 = arith.constant 24 : i32
    %6 = vector.broadcast %c24_i32 : i32 to vector<32x128xi32>
    %7 = arith.cmpi slt, %1, %6 : vector<32x128xi32>
    %cst = arith.constant 0.000000e+00 : f32
    %8 = vector.broadcast %cst : f32 to vector<32x128xf32>
    %c0_1 = arith.constant 0 : index
    %c0_2 = arith.constant 0 : index
    %9 = vector.load %arg13[%c0_1, %c0_2] : memref<32x128xf32, #tpu.memory_space<vmem>>, vector<32x128xf32>
    tpu.vector_store %arg13[%c0_1, %c0_2], %8 {strides = array<i32>} : memref<32x128xf32, #tpu.memory_space<vmem>>, vector<32x128xf32>,
    %c0_3 = arith.constant 0 : index
    %c0_4 = arith.constant 0 : index
    %10 = vector.load %arg13[%c0_3, %c0_4] : memref<32x128xf32, #tpu.memory_space<vmem>>, vector<4x128xf32>
    tpu.vector_store %arg13[%c0_3, %c0_4], %0 {strides = array<i32>} : memref<32x128xf32, #tpu.memory_space<vmem>>, vector<4x128xf32>,
    %c0_5 = arith.constant 0 : index
    %c0_6 = arith.constant 0 : index
    %11 = vector.load %arg13[%c0_5, %c0_6] : memref<32x128xf32, #tpu.memory_space<vmem>>, vector<32x128xf32>
    %c0_7 = arith.constant 0 : index
    %c0_8 = arith.constant 0 : index
    %12 = vector.load %arg2[%c0_7, %c0_8] : memref<32x4xf32, #tpu.memory_space<vmem>>, vector<32x4xf32>
    %cst_9 = arith.constant dense<0.000000e+00> : vector<32x128xf32>
    %13 = tpu.matmul %12, %0, %cst_9 {dimension_numbers = #tpu.dot_dimension_numbers<[1], [0], [0], [1], [0, 0, 1, 1], [], []>} : vector<32x4xf32>, vector<4x128xf32>, vector<32x128xf32> -> vector<32x128xf32>
    %c0_10 = arith.constant 0 : index
    %c0_11 = arith.constant 0 : index
    %14 = vector.load %arg3[%c0_10, %c0_11] : memref<32x1xf32, #tpu.memory_space<vmem>>, vector<32x1xf32>
    %15 = vector.broadcast %14 : vector<32x1xf32> to vector<32x128xf32>
    %16 = arith.addf %13, %15 : vector<32x128xf32>
    %17 = arith.mulf %16, %16 : vector<32x128xf32>
    %18 = math.sin %16 : vector<32x128xf32>
    %cst_12 = arith.constant -2.000000e+02 : f32
    %19 = vector.broadcast %cst_12 : f32 to vector<32x128xf32>
    %20 = arith.mulf %17, %19 : vector<32x128xf32>
    %21 = math.exp %20 : vector<32x128xf32>
    %22 = arith.select %7, %18, %21 : vector<32x128xi1>, vector<32x128xf32>
    %23 = arith.select %5, %17, %22 : vector<32x128xi1>, vector<32x128xf32>
    %24 = arith.select %3, %16, %23 : vector<32x128xi1>, vector<32x128xf32>
    %c0_13 = arith.constant 0 : index
    %c0_14 = arith.constant 0 : index
    %25 = vector.load %arg4[%c0_13, %c0_14] : memref<32x32xf32, #tpu.memory_space<vmem>>, vector<32x32xf32>
    %cst_15 = arith.constant dense<0.000000e+00> : vector<32x128xf32>
    %26 = tpu.matmul %25, %24, %cst_15 {dimension_numbers = #tpu.dot_dimension_numbers<[1], [0], [0], [1], [0, 0, 1, 1], [], []>} : vector<32x32xf32>, vector<32x128xf32>, vector<32x128xf32> -> vector<32x128xf32>
    %c0_16 = arith.constant 0 : index
    %c0_17 = arith.constant 0 : index
    %27 = vector.load %arg5[%c0_16, %c0_17] : memref<32x1xf32, #tpu.memory_space<vmem>>, vector<32x1xf32>
    %28 = vector.broadcast %27 : vector<32x1xf32> to vector<32x128xf32>
    %29 = arith.addf %26, %28 : vector<32x128xf32>
    %30 = arith.mulf %29, %29 : vector<32x128xf32>
    %31 = math.sin %29 : vector<32x128xf32>
    %cst_18 = arith.constant -2.000000e+02 : f32
    %32 = vector.broadcast %cst_18 : f32 to vector<32x128xf32>
    %33 = arith.mulf %30, %32 : vector<32x128xf32>
    %34 = math.exp %33 : vector<32x128xf32>
    %35 = arith.select %7, %31, %34 : vector<32x128xi1>, vector<32x128xf32>
    %36 = arith.select %5, %30, %35 : vector<32x128xi1>, vector<32x128xf32>
    %37 = arith.select %3, %29, %36 : vector<32x128xi1>, vector<32x128xf32>
    %38 = arith.addf %37, %11 : vector<32x128xf32>
    %c0_19 = arith.constant 0 : index
    %c0_20 = arith.constant 0 : index
    %39 = vector.load %arg6[%c0_19, %c0_20] : memref<32x32xf32, #tpu.memory_space<vmem>>, vector<32x32xf32>
    %cst_21 = arith.constant dense<0.000000e+00> : vector<32x128xf32>
    %40 = tpu.matmul %39, %38, %cst_21 {dimension_numbers = #tpu.dot_dimension_numbers<[1], [0], [0], [1], [0, 0, 1, 1], [], []>} : vector<32x32xf32>, vector<32x128xf32>, vector<32x128xf32> -> vector<32x128xf32>
    %c0_22 = arith.constant 0 : index
    %c0_23 = arith.constant 0 : index
    %41 = vector.load %arg7[%c0_22, %c0_23] : memref<32x1xf32, #tpu.memory_space<vmem>>, vector<32x1xf32>
    %42 = vector.broadcast %41 : vector<32x1xf32> to vector<32x128xf32>
    %43 = arith.addf %40, %42 : vector<32x128xf32>
    %44 = arith.mulf %43, %43 : vector<32x128xf32>
    %45 = math.sin %43 : vector<32x128xf32>
    %cst_24 = arith.constant -2.000000e+02 : f32
    %46 = vector.broadcast %cst_24 : f32 to vector<32x128xf32>
    %47 = arith.mulf %44, %46 : vector<32x128xf32>
    %48 = math.exp %47 : vector<32x128xf32>
    %49 = arith.select %7, %45, %48 : vector<32x128xi1>, vector<32x128xf32>
    %50 = arith.select %5, %44, %49 : vector<32x128xi1>, vector<32x128xf32>
    %51 = arith.select %3, %43, %50 : vector<32x128xi1>, vector<32x128xf32>
    %c0_25 = arith.constant 0 : index
    %c0_26 = arith.constant 0 : index
    %52 = vector.load %arg8[%c0_25, %c0_26] : memref<32x32xf32, #tpu.memory_space<vmem>>, vector<32x32xf32>
    %cst_27 = arith.constant dense<0.000000e+00> : vector<32x128xf32>
    %53 = tpu.matmul %52, %51, %cst_27 {dimension_numbers = #tpu.dot_dimension_numbers<[1], [0], [0], [1], [0, 0, 1, 1], [], []>} : vector<32x32xf32>, vector<32x128xf32>, vector<32x128xf32> -> vector<32x128xf32>
    %c0_28 = arith.constant 0 : index
    %c0_29 = arith.constant 0 : index
    %54 = vector.load %arg9[%c0_28, %c0_29] : memref<32x1xf32, #tpu.memory_space<vmem>>, vector<32x1xf32>
    %55 = vector.broadcast %54 : vector<32x1xf32> to vector<32x128xf32>
    %56 = arith.addf %53, %55 : vector<32x128xf32>
    %57 = arith.mulf %56, %56 : vector<32x128xf32>
    %58 = math.sin %56 : vector<32x128xf32>
    %cst_30 = arith.constant -2.000000e+02 : f32
    %59 = vector.broadcast %cst_30 : f32 to vector<32x128xf32>
    %60 = arith.mulf %57, %59 : vector<32x128xf32>
    %61 = math.exp %60 : vector<32x128xf32>
    %62 = arith.select %7, %58, %61 : vector<32x128xi1>, vector<32x128xf32>
    %63 = arith.select %5, %57, %62 : vector<32x128xi1>, vector<32x128xf32>
    %64 = arith.select %3, %56, %63 : vector<32x128xi1>, vector<32x128xf32>
    %65 = arith.addf %64, %38 : vector<32x128xf32>
    %c0_31 = arith.constant 0 : index
    %c0_32 = arith.constant 0 : index
    %66 = vector.load %arg10[%c0_31, %c0_32] : memref<4x32xf32, #tpu.memory_space<vmem>>, vector<4x32xf32>
    %cst_33 = arith.constant dense<0.000000e+00> : vector<4x128xf32>
    %67 = tpu.matmul %66, %65, %cst_33 {dimension_numbers = #tpu.dot_dimension_numbers<[1], [0], [0], [1], [0, 0, 1, 1], [], []>} : vector<4x32xf32>, vector<32x128xf32>, vector<4x128xf32> -> vector<4x128xf32>
    %c0_34 = arith.constant 0 : index
    %c0_35 = arith.constant 0 : index
    %68 = vector.load %arg11[%c0_34, %c0_35] : memref<4x1xf32, #tpu.memory_space<vmem>>, vector<4x1xf32>
    %69 = vector.broadcast %68 : vector<4x1xf32> to vector<4x128xf32>
    %70 = arith.addf %67, %69 : vector<4x128xf32>
    %c0_36 = arith.constant 0 : index
    %c0_37 = arith.constant 0 : index
    %71 = vector.load %arg12[%c0_36, %c0_37] : memref<4x128xf32, #tpu.memory_space<vmem>>, vector<4x128xf32>
    tpu.vector_store %arg12[%c0_36, %c0_37], %70 {strides = array<i32>} : memref<4x128xf32, #tpu.memory_space<vmem>>, vector<4x128xf32>,
    return
  }
  func.func @transform_0(%arg0: i32) -> (i32, i32) {
    %c0_i32 = arith.constant 0 : i32
    %c0_i32_0 = arith.constant 0 : i32
    return %c0_i32, %arg0 : i32, i32
  }
  func.func @transform_1(%arg0: i32) -> (i32, i32) {
    %c0_i32 = arith.constant 0 : i32
    %c0_i32_0 = arith.constant 0 : i32
    %c0_i32_1 = arith.constant 0 : i32
    return %c0_i32, %c0_i32_0 : i32, i32
  }
  func.func @transform_2(%arg0: i32) -> (i32, i32) {
    %c0_i32 = arith.constant 0 : i32
    %c0_i32_0 = arith.constant 0 : i32
    %c0_i32_1 = arith.constant 0 : i32
    return %c0_i32, %c0_i32_0 : i32, i32
  }
  func.func @transform_3(%arg0: i32) -> (i32, i32) {
    %c0_i32 = arith.constant 0 : i32
    %c0_i32_0 = arith.constant 0 : i32
    %c0_i32_1 = arith.constant 0 : i32
    return %c0_i32, %c0_i32_0 : i32, i32
  }
  func.func @transform_4(%arg0: i32) -> (i32, i32) {
    %c0_i32 = arith.constant 0 : i32
    %c0_i32_0 = arith.constant 0 : i32
    %c0_i32_1 = arith.constant 0 : i32
    return %c0_i32, %c0_i32_0 : i32, i32
  }
  func.func @transform_5(%arg0: i32) -> (i32, i32) {
    %c0_i32 = arith.constant 0 : i32
    %c0_i32_0 = arith.constant 0 : i32
    %c0_i32_1 = arith.constant 0 : i32
    return %c0_i32, %c0_i32_0 : i32, i32
  }
  func.func @transform_6(%arg0: i32) -> (i32, i32) {
    %c0_i32 = arith.constant 0 : i32
    %c0_i32_0 = arith.constant 0 : i32
    %c0_i32_1 = arith.constant 0 : i32
    return %c0_i32, %c0_i32_0 : i32, i32
  }
  func.func @transform_7(%arg0: i32) -> (i32, i32) {
    %c0_i32 = arith.constant 0 : i32
    %c0_i32_0 = arith.constant 0 : i32
    %c0_i32_1 = arith.constant 0 : i32
    return %c0_i32, %c0_i32_0 : i32, i32
  }
  func.func @transform_8(%arg0: i32) -> (i32, i32) {
    %c0_i32 = arith.constant 0 : i32
    %c0_i32_0 = arith.constant 0 : i32
    %c0_i32_1 = arith.constant 0 : i32
    return %c0_i32, %c0_i32_0 : i32, i32
  }
  func.func @transform_9(%arg0: i32) -> (i32, i32) {
    %c0_i32 = arith.constant 0 : i32
    %c0_i32_0 = arith.constant 0 : i32
    %c0_i32_1 = arith.constant 0 : i32
    return %c0_i32, %c0_i32_0 : i32, i32
  }
  func.func @transform_10(%arg0: i32) -> (i32, i32) {
    %c0_i32 = arith.constant 0 : i32
    %c0_i32_0 = arith.constant 0 : i32
    %c0_i32_1 = arith.constant 0 : i32
    return %c0_i32, %c0_i32_0 : i32, i32
  }
  func.func @transform_11(%arg0: i32) -> (i32, i32) {
    %c0_i32 = arith.constant 0 : i32
    %c0_i32_0 = arith.constant 0 : i32
    return %c0_i32, %arg0 : i32, i32
  }
}

</mosaic_0001>

<bundles_post_ra>
// kernel: tpu_custom_call.1
= control target key start
LH: loop header
LB: loop body
LE: loop exit
PB: predicated region body
PF: predicated region fallthrough
CT: control target
= control target key end

     0   :  { %16 = vsyncpa [#allocation4], 0  ;;  %s3656_s0 = inlined_call_operand.vmem [shape: f32[4,256], index: 0, kind: input, shape index: {}]   ;;  %s3657_s1 = inlined_call_operand.vmem [shape: f32[32,4], index: 1, kind: input, shape index: {}]   ;;  %s3658_s2 = inlined_call_operand.vmem [shape: f32[32,1], index: 2, kind: input, shape index: {}]   ;;  %s3659_s3 = inlined_call_operand.vmem [shape: f32[32,32], index: 3, kind: input, shape index: {}]   ;;  %s3660_s4 = inlined_call_operand.vmem [shape: f32[32,1], index: 4, kind: input, shape index: {}]   ;;  %s3661_s5 = inlined_call_operand.vmem [shape: f32[32,32], index: 5, kind: input, shape index: {}]   ;;  %s3662_s6 = inlined_call_operand.vmem [shape: f32[32,1], index: 6, kind: input, shape index: {}]   ;;  %s3663_s7 = inlined_call_operand.vmem [shape: f32[32,32], index: 7, kind: input, shape index: {}]   ;;  %s3664_s8 = inlined_call_operand.vmem [shape: f32[32,1], index: 8, kind: input, shape index: {}]   ;;  %s3665_s9 = inlined_call_operand.vmem [shape: f32[4,32], index: 9, kind: input, shape index: {}]   ;;  %s3666_s10 = inlined_call_operand.vmem [shape: f32[4,1], index: 10, kind: input, shape index: {}]   ;;  %s3667_s11 = inlined_call_operand.hbm [shape: f32[4,256], index: 11, kind: output, shape index: {}]  }
   0x1   :  { %18 = vsyncpa [#allocation4 + $0x1], 0  ;;  %s3263_s17 = smov 0   ;;  %s3265_s18 = smov 0  }
   0x2   :  { %s3267_s19 = smov 0   ;;  %s3269_s20 = smov 0  }
   0x3 LB: > { %3669 = sst [smem:[#allocation6_spill]] %s3187_s19  ;;  %s3284_s21 = sadd.s32 4294967295, %s3191_s20   ;;  %s3191_s20 = sphi %s3269_s20, %s3677_s20   ;;  %s3187_s19 = sphi %s3267_s19, %s3674_s19   ;;  %s3183_s18 = sphi %s3265_s18, %s3676_s18   ;;  %s3179_s17 = sphi %s3263_s17, %s3675_s17  }
   0x4   : > { %s2853_s22 = sadd.s32 4294967294, %s3191_s20   ;;  %s3288_s23 = sadd.s32 1, %s3191_s20  }
   0x5   : > { %s267_s24 = sadd.s32 1, %s3187_s19  ;;  %s264_s25 = ssub.s32 %s3191_s20, %s3288_s23 }
   0x6   : > { %p277_p0 = scmp.ne.s32.totalorder %s3187_s19, %s3183_s18  ;;  %p265_p1 = scmp.eq.s32.totalorder %s264_s25, 0 }
   0x7   : > { %p278_p2 = scmp.eq.s32.totalorder %s3284_s21, 1  ;;  %p283_p3 = scmp.ne.s32.totalorder %s3183_s18, %s3179_s17 }
   0x8   : > { %p284_p4 = scmp.eq.s32.totalorder %s2853_s22, 1  ;;  %p2856_p7 = scmp.ge.s32.totalorder %s3191_s20, 1 }
   0x9   : > { %s3299_s26 = scalar_select %p265_p1, %s3187_s19, %s267_s24  }
   0xa   : > { %p3301_p5 = por %p278_p2, %p277_p0  ;;  %p3305_p6 = por %p284_p4, %p283_p3 }
   0xb   : > { %3670 = sst [smem:[#allocation7_spill]] %s3299_s26  ;;  %p339_p8 = scmp.lt.s32.totalorder %s3191_s20, 3 }
   0xd   : > { %p340_p9 = pnand %p2856_p7, %p339_p8 }
   0xe   : > { %p378_p10 = scmp.lt.s32.totalorder (!%p340_p9), %s3284_s21, 1  ;;  %s375_s30 = sand.u32 (!%p340_p9), 1, %s3183_s18  }
   0xf   : > { %343 = sbr.rel (%p340_p9) target bundleno = 1392 (0x570), region = 64  ;;  %s2942_s13 = sshll.u32 (!%p340_p9), %s3284_s21, 6 }
  0x10   : > { %s2781_s26 = scalar_lea.sflag (!%p340_p9), [#allocation4], %s375_s30 }
  0x14   : > { %v409_v0 = vld [vmem:[%s3657_s1] sm:$0xff]  ;;  %vm437_vm0 = vcmask 31744   ;;  %v3193_v1 = vmov 0.0   ;;  %v415_v2 = vld [vmem:[%s3658_s2 + $0x10] sm:$0xff]  ;;  %s379_s14 = scalar_select %p378_p10, %s3284_s21, 1  ;;  %v3194_v3 = vmov 0  }
  0x15   : > { %400 = vst [vmem:[#allocation2 + $0x10] sm:$0xff] %v3193_v1  ;;  %401 = vst [vmem:[#allocation2] sm:$0xff] %v3193_v1  ;;  %2981 = vmatprep.mubr.msk.f32.mxu0 %vm437_vm0, %v409_v0  ;;  %3104 = vset.pattern.permute.xlu0 %v3194_v3  ;;  %vm450_vm1 = vcmask 1043456   ;;  %v416_v4 = vld [vmem:[%s3658_s2 + $0x18] sm:$0xff]  ;;  %v414_v5 = vld [vmem:[%s3658_s2 + $0x8] sm:$0xff]  ;;  %vm1011_vm2 = vcmask 261120  }
  0x16   : > { %3105 = vset.pattern.permute.xlu1 %v3194_v3  ;;  %429 = vperm.xlu0 %3104, %v415_v2   ;;  %s2858_s15 = sshll.u32 %s379_s14, 2  ;;  %v410_v7 = vld [vmem:[%s3657_s1 + $0x8] sm:$0xff]  ;;  %v413_v8 = vld [vmem:[%s3658_s2] sm:$0xff]  ;;  %v411_v9 = vld [vmem:[%s3657_s1 + $0x10] sm:$0xff]  ;;  %v3195_v46 = vmov 683565275  }
  0x17   : > { %s381_s12 = scalar_lea.vmem %s3656_s0, %s2858_s15  ;;  %424 = vperm.xlu1 %3105, %v414_v5   ;;  %v989_v10 = vld [vmem:[%s3660_s4 + $0x10] sm:$0xff]  ;;  %v412_v11 = vld [vmem:[%s3657_s1 + $0x18] sm:$0xff]  ;;  %v988_v13 = vld [vmem:[%s3660_s4 + $0x8] sm:$0xff]  ;;  %v3196_v48 = vmov 2475754826   ;;  %s3621_s15 = scalar_lea.hbm %s3667_s11, %s2942_s13 }
  0x18   : > { %v382_v6 = vld [vmem:[%s381_s12] sm:$0xf]  ;;  %v990_v12 = vld [vmem:[%s3660_s4 + $0x18] sm:$0xff]  ;;  %v1563_v15 = vld [vmem:[%s3662_s6 + $0x10] sm:$0xff]  ;;  %v3197_v51 = vmov 2131351028  }
  0x19   : > { %404 = vst [vmem:[#allocation2 + $0x10] sm:$0xf] %v382_v6  ;;  %2979 = vmatprep.subr.msk.mxu0 %vm450_vm1, %v382_v6  ;;  %v987_v14 = vld [vmem:[%s3660_s4] sm:$0xff]  ;;  %v1564_v16 = vld [vmem:[%s3662_s6 + $0x18] sm:$0xff]  ;;  %v1562_v17 = vld [vmem:[%s3662_s6 + $0x8] sm:$0xff]  ;;  %s2857_s12 = sshll.u32 %s375_s30, 2 }
  0x1a   : > { %434 = vperm.xlu0 %3104, %v416_v4   ;;  %2980 = vmatpush3.msk.msra.mxu0 %vm450_vm1, %v382_v6  ;;  %v1561_v18 = vld [vmem:[%s3662_s6] sm:$0xff]  ;;  %v2132_v19 = vld [vmem:[%s3664_s8 + $0x10] sm:$0xff]  ;;  %v2133_v20 = vld [vmem:[%s3664_s8 + $0x18] sm:$0xff]  ;;  %v3198_v54 = vmov 2102212464   ;;  %s377_s14 = scalar_lea.vmem [#allocation3], %s2857_s12 }
  0x1b   : > { %2982 = vmatmul.mubr.msk.f32.vlgmr.msra.gmra.mxu0 %vm437_vm0, %v410_v7  ;;  %419 = vperm.xlu1 %3105, %v413_v8   ;;  %v2131_v21 = vld [vmem:[%s3664_s8 + $0x8] sm:$0xff]  ;;  %v2130_v22 = vld [vmem:[%s3664_s8] sm:$0xff]  ;;  %v3199_v57 = vmov 920167782   ;;  %v3200_v60 = vmov 1326507024  }
  0x1c   : > { %2984 = vmatprep.mubr.msk.f32.mxu0 %vm437_vm0, %v411_v9  ;;  %v2700_v23 = vld [vmem:[%s3666_s10] sm:$0xf]  ;;  %s2794_s16 = sshll.u32 %s377_s14, 4  ;;  %s3202_s21 = smov [#allocation3]   ;;  %s2795_s16 = int_to_ptr.vmem [resolvable:$true] %s2794_s16 }
  0x1d   : > { %v983_v24 = vld [vmem:[%s3659_s3] sm:$0xff]  ;;  %s3131_s19 = scalar_lea.vmem %s2795_s16, 64  ;;  %s3135_s25 = sshll.u32 %s3202_s21, 4  ;;  %s3136_s25 = int_to_ptr.vmem [resolvable:$false] %s3135_s25 }
  0x1e   : > { %1003 = vperm.xlu0 %3104, %v989_v10   ;;  %2995 = vmatprep.mubr.msk.f32.mxu1 %vm1011_vm2, %v983_v24  ;;  %p3132_p11 = scmp.ne.s32.totalorder %s2795_s16, %s3131_s19  ;;  %s3137_s29 = scalar_lea.vmem %s3136_s25, 128 }
  0x1f   : > { %2985 = vmatmul.mubr.msk.f32.gmra.mxu0 %vm437_vm0, %v412_v11  ;;  %1008 = vperm.xlu1 %3105, %v990_v12   ;;  %p3138_p0 = scmp.lt.s32.totalorder %s2795_s16, %s3136_s25  ;;  %p3139_p1 = scmp.lt.s32.totalorder %s3137_s29, %s3131_s19 }
  0x20   : > { %p3133_p12 = pnand %p3132_p11, %p3301_p5 }
  0x21   : > { %p3140_p2 = por %p3139_p1, %p3138_p0 }
  0x22   : > { %998 = vperm.xlu0 %3104, %v988_v13   ;;  %p3134_p13 = pneg %p3133_p12 }
  0x23   : > { %993 = vperm.xlu1 %3105, %v987_v14  }
  0x24   : > { %p3141_p3 = pnand %p3140_p2, %p3134_p13 }
  0x26   : > { %1577 = vperm.xlu0 %3104, %v1563_v15  }
  0x27   : > { %1582 = vperm.xlu1 %3105, %v1564_v16  }
  0x2a   : > { %1572 = vperm.xlu0 %3104, %v1562_v17  }
  0x2b   : > { %1567 = vperm.xlu1 %3105, %v1561_v18  }
  0x2e   : > { %2146 = vperm.xlu0 %3104, %v2132_v19  }
  0x2f   : > { %2151 = vperm.xlu1 %3105, %v2133_v20  }
  0x32   : > { %2141 = vperm.xlu0 %3104, %v2131_v21  }
  0x33   : > { %2136 = vperm.xlu1 %3105, %v2130_v22  }
  0x36   : > { %2703 = vperm.xlu0 %3104, %v2700_v23  }
  0x91   : > { %v430_v25 = vpop.permute.xlu0 %429 }
  0x95   : > { %v435_v28 = vpop.permute.xlu0 %434 }
  0xdb   : > { %v3389_v26 = vpop.f32.mrf.mxu0 }
  0xdd   : > { %v3391_v27 = vpop.f32.mrf.mxu0 }
  0xdf   : > { %v2986_v29 = vpop.f32.mrf.mxu0 }
  0xe0   : > { %v536_v30 = vadd.f32 %v2986_v29, %v435_v28 }
  0xe1   : > { %v530_v31 = vpop.f32.mrf.mxu0 }
  0xe2   : > { %v542_v32 = vmul.f32 %v536_v30, %v536_v30  ;;  %v3393_v33 = vadd.f32 %v530_v31, %v430_v25 }
  0xe4   : > { %v962_v34 = vmul.f32 -200.0, %v542_v32  ;;  %v754_v35 = vand.u32 2139095040, %v3393_v33  ;;  %v751_v40 = vand.u32 2147483647, %v3393_v33  ;;  %vm753_vm10 = vcmp.lt.s32.totalorder %v3393_v33, 0 }
  0xe5   : > { %vm843_vm15 = vweird.f32 %v3393_v33 }
  0xe6   : > { %v969_v36 = vmul.f32 1.442695, %v962_v34  ;;  %v755_v37 = vshrl.u32 %v754_v35, 23  ;;  %v758_v43 = vand.u32 8388607, %v751_v40 }
  0xe7   : > { %vm752_vm11 = vcmp.le.f32.partialorder %v751_v40, 0.7853982 }
  0xe8   : > { %3106 = vpow2.f32 %v969_v36  ;;  %v2872_v38 = vadd.s32 4294967169, %v755_v37  ;;  %v759_v62 = vor.u32 8388608, %v758_v43 }
  0xea   : > { %v761_v39 = vadd.s32 1, %v2872_v38  ;;  %v799_v14 = vshll.u32 %v759_v62, 8 }
  0xec   : > { %vm762_vm3 = vcmp.gt.s32.totalorder %v761_v39, 0 }
  0xed   : > { %v763_v41 = vsel %vm762_vm3, %v761_v39, 0 }
  0xee   : > { %v765_v42 = vand.u32 31, %v763_v41  ;;  %v764_v45 = vshrl.u32 %v763_v41, 5 }
  0xf0   : > { %v766_v44 = vsub.s32 32, %v765_v42  ;;  %v768_v47 = vshll.u32 %v3195_v46, %v765_v42  ;;  %v771_v49 = vshll.u32 %v3196_v48, %v765_v42  ;;  %v774_v53 = vshll.u32 %v3197_v51, %v765_v42 }
  0xf1   : > { %v777_v56 = vshll.u32 %v3198_v54, %v765_v42  ;;  %v780_v59 = vshll.u32 %v3199_v57, %v765_v42  ;;  %vm783_vm4 = vcmp.lt.s32.totalorder %v764_v45, 1  ;;  %vm786_vm5 = vcmp.lt.s32.totalorder %v764_v45, 4 }
  0xf2   : > { %v769_v50 = vshrl.u32 %v3196_v48, %v766_v44  ;;  %v772_v52 = vshrl.u32 %v3197_v51, %v766_v44  ;;  %v775_v55 = vshrl.u32 %v3198_v54, %v766_v44  ;;  %v778_v58 = vshrl.u32 %v3199_v57, %v766_v44 }
  0xf3   : > { %v781_v61 = vshrl.u32 %v3200_v60, %v766_v44  ;;  %v767_v9 = vshrl.u32 %v3195_v46, %v766_v44  ;;  %vm785_vm6 = vcmp.lt.s32.totalorder %v764_v45, 3  ;;  %vm784_vm7 = vcmp.lt.s32.totalorder %v764_v45, 2 }
  0xf4   : > { %v770_v63 = vor.u32 %v769_v50, %v768_v47  ;;  %v773_v0 = vor.u32 %v772_v52, %v771_v49  ;;  %v776_v2 = vor.u32 %v775_v55, %v774_v53  ;;  %v779_v4 = vor.u32 %v778_v58, %v777_v56 }
  0xf5   : > { %v3107_v3 = vpop.eup %3106  ;;  %v782_v5 = vor.u32 %v781_v61, %v780_v59 }
  0xf6   : > { %v788_v6 = vsel %vm786_vm5, %v776_v2, 2102212464  ;;  %v791_v7 = vsel %vm783_vm4, %v770_v63, %v773_v0  ;;  %v795_v8 = vsel %vm783_vm4, %v773_v0, %v776_v2  ;;  %2987 = vmatprep.subr.mxu1 %v3107_v3  ;;  %v792_v10 = vsel %vm786_vm5, %v779_v4, 920167782 }
  0xf7   : > { %v796_v11 = vsel %vm786_vm5, %v782_v5, 1326507024  ;;  %2988 = vmatpush3.msra.mxu1 %v3107_v3  ;;  %v793_v12 = vsel %vm785_vm6, %v776_v2, %v792_v10  ;;  %v787_v15 = vsel %vm783_vm4, %v767_v9, %v770_v63  ;;  %v789_v16 = vsel %vm785_vm6, %v773_v0, %v788_v6  ;;  %v425_v5 = vpop.permute.xlu1 %424 }
  0xf8   : > { %v797_v13 = vsel %vm785_vm6, %v779_v4, %v796_v11  ;;  %v794_v17 = vsel %vm784_vm7, %v791_v7, %v793_v12  ;;  %v790_v23 = vsel %vm784_vm7, %v787_v15, %v789_v16  ;;  %v526_v9 = vadd.f32 %v3389_v26, %v425_v5  ;;  %v984_v26 = vld [vmem:[%s3659_s3 + $0x8] sm:$0xff]  ;;  %v985_v16 = vld [vmem:[%s3659_s3 + $0x10] sm:$0xff] }
  0xf9   : > { %v798_v18 = vsel %vm784_vm7, %v795_v8, %v797_v13  ;;  %v3413_v21 = vmul.u32.u64.low %v799_v14, %v794_v17  ;;  %v3414_v22 = vmul.u32.u64.high %v799_v14, %v794_v17, %v3413_v21  ;;  %v806_v25 = vmul.u32 %v799_v14, %v790_v23 }
  0xfa   : > { %v3410_v19 = vmul.u32.u64.low %v799_v14, %v798_v18  ;;  %v3411_v20 = vmul.u32.u64.high %v799_v14, %v798_v18, %v3410_v19  ;;  %v540_v14 = vmul.f32 %v526_v9, %v526_v9 }
  0xfb   : > { %v809_v24 = vadd.s32 1, %v3414_v22  ;;  %v420_v12 = vpop.permute.xlu1 %419 }
  0xfc   : > { %vm808_vm8 = vc.u32 %v3411_v20, %v3413_v21  ;;  %v807_v41 = vadd.s32 %v3413_v21, %v3411_v20  ;;  %v521_v15 = vadd.f32 %v3391_v27, %v420_v12  ;;  %v986_v27 = vld [vmem:[%s3659_s3 + $0x18] sm:$0xff] }
  0xfd   : > { %v810_v28 = vsel %vm808_vm8, %v809_v24, %v3414_v22  ;;  %v1004_v22 = vpop.permute.xlu0 %1003 }
  0xfe   : > { %v811_v29 = vadd.s32 %v810_v28, %v806_v25 }
  0xff   : > { %v1009_v19 = vpop.permute.xlu1 %1008 }
 0x100   : > { %v812_v30 = vadd.s32 536870912, %v811_v29 }
 0x102   : > { %v813_v31 = vshrl.u32 %v812_v30, 30 }
 0x104   : > { %v814_v32 = vshll.u32 %v813_v31, 30  ;;  %v837_v59 = vsub.s32 4, %v813_v31 }
 0x106   : > { %v815_v34 = vsub.s32 %v811_v29, %v814_v32  ;;  %v838_v63 = vsel %vm753_vm10, %v837_v59, %v813_v31 }
 0x107   : > { %v840_v0 = vsel %vm752_vm11, 0, %v838_v63 }
 0x108   : > { %v817_v35 = vsub.s32 0, %v815_v34  ;;  %v844_v2 = vadd.s32 3, %v840_v0 }
 0x10a   : > { %v2873_v36 = vmin.u32 %v817_v35, %v815_v34  ;;  %v845_v3 = vand.u32 3, %v844_v2 }
 0x10c   : > { %v819_v37 = vclz %v2873_v36  ;;  %vm850_vm12 = vcmp.eq.s32.totalorder %v845_v3, 2  ;;  %vm847_vm13 = vcmp.eq.s32.totalorder %v845_v3, 0  ;;  %vm846_vm14 = vcmp.lt.s32.totalorder %v845_v3, 2 }
 0x10e   : > { %v2874_v38 = vadd.s32 4294967294, %v819_v37 }
 0x110   : > { %vm2875_vm9 = vcmp.lt.s32.totalorder %v2874_v38, 0 }
 0x111   : > { %v822_v39 = vsel %vm2875_vm9, 0, %v2874_v38 }
 0x112   : > { %v823_v42 = vsub.s32 32, %v822_v39  ;;  %v827_v43 = vsub.s32 4294967266, %v822_v39  ;;  %v824_v44 = vshll.u32 %v815_v34, %v822_v39 }
 0x114   : > { %v825_v45 = vshrl.u32 %v807_v41, %v823_v42  ;;  %v828_v47 = vadd.s32 127, %v827_v43 }
 0x116   : > { %v826_v49 = vor.u32 %v825_v45, %v824_v44  ;;  %v829_v50 = vshll.u32 %v828_v47, 23 }
 0x118   : > { %v830_v52 = vor.u32 4788187, %v829_v50  ;;  %v833_v55 = vcvt.s32.f32 %v826_v49 }
 0x11a   : > { %v831_v53 = vand.u32 2147483647, %v830_v52 }
 0x11c   : > { %v834_v56 = vmul.f32 %v833_v55, %v831_v53 }
 0x11e   : > { %v835_v58 = vxor.u32 2147483648, %v834_v56 }
 0x120   : > { %v836_v61 = vsel %vm753_vm10, %v835_v58, %v834_v56 }
 0x121   : > { %v839_v62 = vsel %vm752_vm11, %v3393_v33, %v836_v61  ;;  %v1557_v33 = vld [vmem:[%s3661_s5] sm:$0xff] }
 0x122   : > { %3108 = vcosq.f32 %v839_v62  ;;  %3009 = vmatprep.mubr.msk.f32.mxu0 %vm1011_vm2, %v1557_v33 }
 0x123   : > { %3110 = vsinq.f32 %v839_v62 }
 0x12f   : > { %v3109_v4 = vpop.eup %3108 }
 0x130   : > { %v3111_v6 = vpop.eup %3110  ;;  %v851_v7 = vxor.u32 2147483648, %v3109_v4 }
 0x131   : > { %v848_v8 = vxor.u32 2147483648, %v3111_v6 }
 0x132   : > { %v852_v10 = vsel %vm850_vm12, %v851_v7, %v3111_v6 }
 0x133   : > { %v849_v40 = vsel %vm847_vm13, %v3109_v4, %v848_v8 }
 0x134   : > { %v853_v11 = vsel %vm846_vm14, %v849_v40, %v852_v10 }
 0x135   : > { %v854_v13 = vsel %vm843_vm15, nan, %v853_v11 }
 0x136   : > { %2989 = vmatprep.subr.mxu1 %v854_v13 }
 0x137   : > { %2990 = vmatpush3.msra.mxu1 %v854_v13 }
 0x138   : > { %2991 = vmatprep.subr.mxu1 %v540_v14 }
 0x139   : > { %2992 = vmatpush3.msra.mxu1 %v540_v14 }
 0x13a   : > { %2993 = vmatprep.subr.mxu1 %v521_v15 }
 0x13b   : > { %2994 = vmatpush3.msra.mxu1 %v521_v15 }
 0x13c   : > { %2996 = vmatmul.mubr.msk.f32.vlgmr.msra.gmra.mxu1 %vm1011_vm2, %v984_v26 }
 0x13d   : > { %2998 = vmatprep.mubr.msk.f32.mxu1 %vm1011_vm2, %v985_v16 }
 0x140   : > { %2999 = vmatmul.mubr.msk.f32.gmra.mxu1 %vm1011_vm2, %v986_v27 }
 0x1fc   : > { %v3443_v17 = vpop.f32.mrf.mxu1 }
 0x1fe   : > { %v3445_v18 = vpop.f32.mrf.mxu1 }
 0x200   : > { %v3000_v20 = vpop.f32.mrf.mxu1 }
 0x201   : > { %v1106_v21 = vadd.f32 %v3000_v20, %v1009_v19 }
 0x202   : > { %v1100_v23 = vpop.f32.mrf.mxu1 }
 0x203   : > { %v1112_v24 = vmul.f32 %v1106_v21, %v1106_v21  ;;  %v3447_v25 = vadd.f32 %v1100_v23, %v1004_v22 }
 0x205   : > { %v1532_v28 = vmul.f32 -200.0, %v1112_v24  ;;  %v1324_v29 = vand.u32 2139095040, %v3447_v25  ;;  %v1321_v35 = vand.u32 2147483647, %v3447_v25  ;;  %vm1323_vm8 = vcmp.lt.s32.totalorder %v3447_v25, 0 }
 0x206   : > { %vm1413_vm13 = vweird.f32 %v3447_v25 }
 0x207   : > { %v1539_v30 = vmul.f32 1.442695, %v1532_v28  ;;  %v1325_v31 = vshrl.u32 %v1324_v29, 23  ;;  %v1328_v38 = vand.u32 8388607, %v1321_v35 }
 0x208   : > { %vm1322_vm9 = vcmp.le.f32.partialorder %v1321_v35, 0.7853982 }
 0x209   : > { %3112 = vpow2.f32 %v1539_v30  ;;  %v2892_v32 = vadd.s32 4294967169, %v1325_v31  ;;  %v1329_v56 = vor.u32 8388608, %v1328_v38 }
 0x20b   : > { %v1331_v34 = vadd.s32 1, %v2892_v32  ;;  %v1369_v10 = vshll.u32 %v1329_v56, 8 }
 0x20d   : > { %vm1332_vm0 = vcmp.gt.s32.totalorder %v1331_v34, 0 }
 0x20e   : > { %v1333_v36 = vsel %vm1332_vm0, %v1331_v34, 0 }
 0x20f   : > { %v1335_v37 = vand.u32 31, %v1333_v36  ;;  %v1334_v41 = vshrl.u32 %v1333_v36, 5 }
 0x211   : > { %v1336_v39 = vsub.s32 32, %v1335_v37  ;;  %v1338_v42 = vshll.u32 %v3195_v46, %v1335_v37  ;;  %v1341_v43 = vshll.u32 %v3196_v48, %v1335_v37  ;;  %v1344_v47 = vshll.u32 %v3197_v51, %v1335_v37 }
 0x212   : > { %v1347_v50 = vshll.u32 %v3198_v54, %v1335_v37  ;;  %v1350_v53 = vshll.u32 %v3199_v57, %v1335_v37  ;;  %vm1353_vm1 = vcmp.lt.s32.totalorder %v1334_v41, 1  ;;  %vm1356_vm3 = vcmp.lt.s32.totalorder %v1334_v41, 4 }
 0x213   : > { %v1339_v44 = vshrl.u32 %v3196_v48, %v1336_v39  ;;  %v1342_v45 = vshrl.u32 %v3197_v51, %v1336_v39  ;;  %v1345_v49 = vshrl.u32 %v3198_v54, %v1336_v39  ;;  %v1348_v52 = vshrl.u32 %v3199_v57, %v1336_v39 }
 0x214   : > { %v1351_v55 = vshrl.u32 %v3200_v60, %v1336_v39  ;;  %v1337_v2 = vshrl.u32 %v3195_v46, %v1336_v39  ;;  %vm1355_vm4 = vcmp.lt.s32.totalorder %v1334_v41, 3  ;;  %vm1354_vm5 = vcmp.lt.s32.totalorder %v1334_v41, 2 }
 0x215   : > { %v1340_v58 = vor.u32 %v1339_v44, %v1338_v42  ;;  %v1343_v59 = vor.u32 %v1342_v45, %v1341_v43  ;;  %v1346_v61 = vor.u32 %v1345_v49, %v1344_v47  ;;  %v1349_v63 = vor.u32 %v1348_v52, %v1347_v50 }
 0x216   : > { %v3463_v62 = vpop.eup %3112  ;;  %v1352_v0 = vor.u32 %v1351_v55, %v1350_v53 }
 0x217   : > { %v1358_v3 = vsel %vm1356_vm3, %v1346_v61, 2102212464  ;;  %v1361_v4 = vsel %vm1353_vm1, %v1340_v58, %v1343_v59  ;;  %v1365_v5 = vsel %vm1353_vm1, %v1343_v59, %v1346_v61  ;;  %v1362_v6 = vsel %vm1356_vm3, %v1349_v63, 920167782  ;;  %3001 = vmatprep.subr.mxu0 %v3463_v62 }
 0x218   : > { %v1366_v7 = vsel %vm1356_vm3, %v1352_v0, 1326507024  ;;  %v1363_v8 = vsel %vm1355_vm4, %v1346_v61, %v1362_v6  ;;  %v1357_v40 = vsel %vm1353_vm1, %v1337_v2, %v1340_v58  ;;  %v1359_v11 = vsel %vm1355_vm4, %v1343_v59, %v1358_v3  ;;  %3002 = vmatpush3.msra.mxu0 %v3463_v62  ;;  %v999_v2 = vpop.permute.xlu0 %998 }
 0x219   : > { %v1367_v9 = vsel %vm1355_vm4, %v1349_v63, %v1366_v7  ;;  %v1364_v12 = vsel %vm1354_vm5, %v1361_v4, %v1363_v8  ;;  %v1360_v27 = vsel %vm1354_vm5, %v1357_v40, %v1359_v11  ;;  %v1096_v4 = vadd.f32 %v3443_v17, %v999_v2 }
 0x21a   : > { %v1368_v13 = vsel %vm1354_vm5, %v1365_v5, %v1367_v9  ;;  %v3470_v26 = vmul.u32.u64.low %v1369_v10, %v1364_v12  ;;  %v3471_v16 = vmul.u32.u64.high %v1369_v10, %v1364_v12, %v3470_v26  ;;  %v1376_v19 = vmul.u32 %v1369_v10, %v1360_v27  ;;  %v405_v12 = vld [vmem:[#allocation2 + $0x10] sm:$0xff] }
 0x21b   : > { %v3467_v14 = vmul.u32.u64.low %v1369_v10, %v1368_v13  ;;  %v3468_v15 = vmul.u32.u64.high %v1369_v10, %v1368_v13, %v3467_v14  ;;  %v3483_v8 = vmul.f32 %v1096_v4, %v1096_v4  ;;  %v994_v10 = vpop.permute.xlu1 %993  ;;  %v1560_v13 = vld [vmem:[%s3661_s5 + $0x18] sm:$0xff] }
 0x21c   : > { %v1379_v33 = vadd.s32 1, %v3471_v16  ;;  %v1091_v11 = vadd.f32 %v3445_v18, %v994_v10  ;;  %v1559_v18 = vld [vmem:[%s3661_s5 + $0x10] sm:$0xff]  ;;  %v2126_v14 = vld [vmem:[%s3663_s7] sm:$0xff] }
 0x21d   : > { %vm1378_vm6 = vc.u32 %v3468_v15, %v3470_v26  ;;  %v1377_v36 = vadd.s32 %v3470_v26, %v3468_v15  ;;  %3023 = vmatprep.mubr.msk.f32.mxu1 %vm1011_vm2, %v2126_v14 }
 0x21e   : > { %v1380_v20 = vsel %vm1378_vm6, %v1379_v33, %v3471_v16  ;;  %v3491_v17 = vadd.f32 %v1091_v11, %v405_v12 }
 0x21f   : > { %v1381_v21 = vadd.s32 %v1380_v20, %v1376_v19  ;;  %v1583_v16 = vpop.permute.xlu1 %1582  ;;  %v1578_v19 = vpop.permute.xlu0 %1577 }
 0x221   : > { %v1382_v22 = vadd.s32 536870912, %v1381_v21 }
 0x223   : > { %v1383_v23 = vshrl.u32 %v1382_v22, 30 }
 0x225   : > { %v1384_v24 = vshll.u32 %v1383_v23, 30  ;;  %v1407_v53 = vsub.s32 4, %v1383_v23 }
 0x227   : > { %v1385_v28 = vsub.s32 %v1381_v21, %v1384_v24  ;;  %v1408_v58 = vsel %vm1323_vm8, %v1407_v53, %v1383_v23 }
 0x228   : > { %v1410_v59 = vsel %vm1322_vm9, 0, %v1408_v58 }
 0x229   : > { %v1387_v29 = vsub.s32 0, %v1385_v28  ;;  %v1414_v61 = vadd.s32 3, %v1410_v59 }
 0x22b   : > { %v2893_v30 = vmin.u32 %v1387_v29, %v1385_v28  ;;  %v1415_v63 = vand.u32 3, %v1414_v61 }
 0x22d   : > { %v1389_v31 = vclz %v2893_v30  ;;  %vm1420_vm10 = vcmp.eq.s32.totalorder %v1415_v63, 2  ;;  %vm1417_vm11 = vcmp.eq.s32.totalorder %v1415_v63, 0  ;;  %vm1416_vm12 = vcmp.lt.s32.totalorder %v1415_v63, 2 }
 0x22f   : > { %v2894_v32 = vadd.s32 4294967294, %v1389_v31 }
 0x231   : > { %vm2895_vm7 = vcmp.lt.s32.totalorder %v2894_v32, 0 }
 0x232   : > { %v1392_v34 = vsel %vm2895_vm7, 0, %v2894_v32 }
 0x233   : > { %v1393_v37 = vsub.s32 32, %v1392_v34  ;;  %v1397_v38 = vsub.s32 4294967266, %v1392_v34  ;;  %v1394_v39 = vshll.u32 %v1385_v28, %v1392_v34 }
 0x235   : > { %v1395_v41 = vshrl.u32 %v1377_v36, %v1393_v37  ;;  %v1398_v42 = vadd.s32 127, %v1397_v38 }
 0x237   : > { %v1396_v43 = vor.u32 %v1395_v41, %v1394_v39  ;;  %v1399_v44 = vshll.u32 %v1398_v42, 23 }
 0x239   : > { %v1400_v45 = vor.u32 4788187, %v1399_v44  ;;  %v1403_v49 = vcvt.s32.f32 %v1396_v43 }
 0x23b   : > { %v1401_v47 = vand.u32 2147483647, %v1400_v45 }
 0x23d   : > { %v1404_v50 = vmul.f32 %v1403_v49, %v1401_v47 }
 0x23f   : > { %v1405_v52 = vxor.u32 2147483648, %v1404_v50 }
 0x241   : > { %v1406_v55 = vsel %vm1323_vm8, %v1405_v52, %v1404_v50 }
 0x242   : > { %v1409_v56 = vsel %vm1322_vm9, %v3447_v25, %v1406_v55  ;;  %v1558_v25 = vld [vmem:[%s3661_s5 + $0x8] sm:$0xff] }
 0x243   : > { %3114 = vcosq.f32 %v1409_v56 }
 0x244   : > { %3116 = vsinq.f32 %v1409_v56 }
 0x250   : > { %v3115_v0 = vpop.eup %3114 }
 0x251   : > { %v3117_v3 = vpop.eup %3116  ;;  %v1421_v5 = vxor.u32 2147483648, %v3115_v0 }
 0x252   : > { %v1418_v6 = vxor.u32 2147483648, %v3117_v3 }
 0x253   : > { %v1422_v7 = vsel %vm1420_vm10, %v1421_v5, %v3117_v3 }
 0x254   : > { %v1419_v35 = vsel %vm1417_vm11, %v3115_v0, %v1418_v6 }
 0x255   : > { %v1423_v9 = vsel %vm1416_vm12, %v1419_v35, %v1422_v7  ;;  %vm3201_vm12 = vmmov 0  }
 0x256   : > { %v3486_v40 = vsel %vm1413_vm13, nan, %v1423_v9 }
 0x257   : > { %3003 = vmatprep.subr.mxu0 %v3486_v40 }
 0x258   : > { %3004 = vmatpush3.msra.mxu0 %v3486_v40 }
 0x259   : > { %3005 = vmatprep.subr.mxu0 %v3483_v8 }
 0x25a   : > { %3006 = vmatpush3.msra.mxu0 %v3483_v8 }
 0x25b   : > { %3007 = vmatprep.subr.mxu0 %v3491_v17 }
 0x25c   : > { %3008 = vmatpush3.msra.mxu0 %v3491_v17 }
 0x25d   : > { %3010 = vmatmul.mubr.msk.f32.vlgmr.msra.gmra.mxu0 %vm1011_vm2, %v1558_v25  ;;  %3029 = vmatprep.subr.mxu0 %v3193_v1 }
 0x25e   : > { %3012 = vmatprep.mubr.msk.f32.mxu0 %vm1011_vm2, %v1559_v18 }
 0x261   : > { %3013 = vmatmul.mubr.msk.f32.gmra.mxu0 %vm1011_vm2, %v1560_v13 }
 0x262   : > { %3037 = vmatprep.mubr.msk.f32.mxu0 %vm3201_vm12, %v3193_v1 }
 0x31d   : > { %v3514_v15 = vpop.f32.mrf.mxu0 }
 0x31f   : > { %v3516_v26 = vpop.f32.mrf.mxu0 }
 0x321   : > { %v3014_v27 = vpop.f32.mrf.mxu0 }
 0x322   : > { %v1679_v33 = vadd.f32 %v3014_v27, %v1583_v16 }
 0x323   : > { %v1673_v20 = vpop.f32.mrf.mxu0 }
 0x324   : > { %v1685_v21 = vmul.f32 %v1679_v33, %v1679_v33  ;;  %v3518_v22 = vadd.f32 %v1673_v20, %v1578_v19 }
 0x326   : > { %v2105_v23 = vmul.f32 -200.0, %v1685_v21  ;;  %v1897_v24 = vand.u32 2139095040, %v3518_v22  ;;  %v1894_v32 = vand.u32 2147483647, %v3518_v22  ;;  %vm1896_vm6 = vcmp.lt.s32.totalorder %v3518_v22, 0 }
 0x327   : > { %vm1986_vm11 = vweird.f32 %v3518_v22 }
 0x328   : > { %v2112_v28 = vmul.f32 1.442695, %v2105_v23  ;;  %v1898_v29 = vshrl.u32 %v1897_v24, 23  ;;  %v1901_v37 = vand.u32 8388607, %v1894_v32 }
 0x329   : > { %vm1895_vm7 = vcmp.le.f32.partialorder %v1894_v32, 0.7853982 }
 0x32a   : > { %3118 = vpow2.f32 %v2112_v28  ;;  %v2912_v30 = vadd.s32 4294967169, %v1898_v29  ;;  %v1902_v55 = vor.u32 8388608, %v1901_v37 }
 0x32c   : > { %v1904_v31 = vadd.s32 1, %v2912_v30  ;;  %v1942_v10 = vshll.u32 %v1902_v55, 8 }
 0x32e   : > { %vm1905_vm14 = vcmp.gt.s32.totalorder %v1904_v31, 0 }
 0x32f   : > { %v1906_v34 = vsel %vm1905_vm14, %v1904_v31, 0 }
 0x330   : > { %v1908_v36 = vand.u32 31, %v1906_v34  ;;  %v1907_v39 = vshrl.u32 %v1906_v34, 5 }
 0x332   : > { %v1909_v38 = vsub.s32 32, %v1908_v36  ;;  %v1911_v41 = vshll.u32 %v3195_v46, %v1908_v36  ;;  %v1914_v42 = vshll.u32 %v3196_v48, %v1908_v36  ;;  %v1917_v45 = vshll.u32 %v3197_v51, %v1908_v36 }
 0x333   : > { %v1920_v49 = vshll.u32 %v3198_v54, %v1908_v36  ;;  %v1923_v52 = vshll.u32 %v3199_v57, %v1908_v36  ;;  %vm1926_vm15 = vcmp.lt.s32.totalorder %v1907_v39, 1  ;;  %vm1929_vm0 = vcmp.lt.s32.totalorder %v1907_v39, 4 }
 0x334   : > { %v1912_v43 = vshrl.u32 %v3196_v48, %v1909_v38  ;;  %v1915_v44 = vshrl.u32 %v3197_v51, %v1909_v38  ;;  %v1918_v47 = vshrl.u32 %v3198_v54, %v1909_v38  ;;  %v1921_v50 = vshrl.u32 %v3199_v57, %v1909_v38 }
 0x335   : > { %v1924_v53 = vshrl.u32 %v3200_v60, %v1909_v38  ;;  %v1910_v5 = vshrl.u32 %v3195_v46, %v1909_v38  ;;  %vm1928_vm1 = vcmp.lt.s32.totalorder %v1907_v39, 3  ;;  %vm1927_vm3 = vcmp.lt.s32.totalorder %v1907_v39, 2 }
 0x336   : > { %v1913_v56 = vor.u32 %v1912_v43, %v1911_v41  ;;  %v1916_v58 = vor.u32 %v1915_v44, %v1914_v42  ;;  %v1919_v59 = vor.u32 %v1918_v47, %v1917_v45  ;;  %v1922_v63 = vor.u32 %v1921_v50, %v1920_v49 }
 0x337   : > { %v3119_v61 = vpop.eup %3118  ;;  %v1925_v0 = vor.u32 %v1924_v53, %v1923_v52 }
 0x338   : > { %v1931_v2 = vsel %vm1929_vm0, %v1919_v59, 2102212464  ;;  %v1934_v3 = vsel %vm1926_vm15, %v1913_v56, %v1916_v58  ;;  %v1938_v4 = vsel %vm1926_vm15, %v1916_v58, %v1919_v59  ;;  %3015 = vmatprep.subr.mxu1 %v3119_v61  ;;  %v1935_v6 = vsel %vm1929_vm0, %v1922_v63, 920167782 }
 0x339   : > { %v1939_v7 = vsel %vm1929_vm0, %v1925_v0, 1326507024  ;;  %3016 = vmatpush3.msra.mxu1 %v3119_v61  ;;  %v1936_v35 = vsel %vm1928_vm1, %v1919_v59, %v1935_v6  ;;  %v1930_v11 = vsel %vm1926_vm15, %v1910_v5, %v1913_v56  ;;  %v1932_v12 = vsel %vm1928_vm1, %v1916_v58, %v1931_v2 }
 0x33a   : > { %v1940_v9 = vsel %vm1928_vm1, %v1922_v63, %v1939_v7  ;;  %v1937_v25 = vsel %vm1927_vm3, %v1934_v3, %v1936_v35  ;;  %v1933_v33 = vsel %vm1927_vm3, %v1930_v11, %v1932_v12  ;;  %v1573_v7 = vpop.permute.xlu0 %1572 }
 0x33b   : > { %v1941_v18 = vsel %vm1927_vm3, %v1938_v4, %v1940_v9  ;;  %v3538_v16 = vmul.u32.u64.low %v1942_v10, %v1937_v25  ;;  %v3539_v27 = vmul.u32.u64.high %v1942_v10, %v1937_v25, %v3538_v16  ;;  %v1949_v20 = vmul.u32 %v1942_v10, %v1933_v33 }
 0x33c   : > { %v3535_v13 = vmul.u32.u64.low %v1942_v10, %v1941_v18  ;;  %v3536_v14 = vmul.u32.u64.high %v1942_v10, %v1941_v18, %v3535_v13  ;;  %v1669_v9 = vadd.f32 %v3514_v15, %v1573_v7  ;;  %v1568_v18 = vpop.permute.xlu1 %1567  ;;  %v2127_v15 = vld [vmem:[%s3663_s7 + $0x8] sm:$0xff] }
 0x33d   : > { %v1952_v19 = vadd.s32 1, %v3539_v27  ;;  %v1664_v13 = vadd.f32 %v3516_v26, %v1568_v18  ;;  %v2129_v26 = vld [vmem:[%s3663_s7 + $0x18] sm:$0xff] }
 0x33e   : > { %vm1951_vm4 = vc.u32 %v3536_v14, %v3538_v16  ;;  %v1950_v39 = vadd.s32 %v3538_v16, %v3536_v14  ;;  %v1683_v25 = vmul.f32 %v1669_v9, %v1669_v9  ;;  %v2128_v14 = vld [vmem:[%s3663_s7 + $0x10] sm:$0xff] }
 0x33f   : > { %v1953_v21 = vsel %vm1951_vm4, %v1952_v19, %v3539_v27 }
 0x340   : > { %v1954_v23 = vadd.s32 %v1953_v21, %v1949_v20  ;;  %v2152_v27 = vpop.permute.xlu1 %2151  ;;  %v2147_v20 = vpop.permute.xlu0 %2146 }
 0x342   : > { %v1955_v24 = vadd.s32 536870912, %v1954_v23 }
 0x344   : > { %v1956_v28 = vshrl.u32 %v1955_v24, 30 }
 0x346   : > { %v1957_v29 = vshll.u32 %v1956_v28, 30  ;;  %v1980_v58 = vsub.s32 4, %v1956_v28 }
 0x348   : > { %v1958_v30 = vsub.s32 %v1954_v23, %v1957_v29  ;;  %v1981_v63 = vsel %vm1896_vm6, %v1980_v58, %v1956_v28 }
 0x349   : > { %v1983_v0 = vsel %vm1895_vm7, 0, %v1981_v63 }
 0x34a   : > { %v1960_v31 = vsub.s32 0, %v1958_v30  ;;  %v1987_v2 = vadd.s32 3, %v1983_v0 }
 0x34c   : > { %v2913_v34 = vmin.u32 %v1960_v31, %v1958_v30  ;;  %v1988_v3 = vand.u32 3, %v1987_v2 }
 0x34e   : > { %v1962_v36 = vclz %v2913_v34  ;;  %vm1993_vm8 = vcmp.eq.s32.totalorder %v1988_v3, 2  ;;  %vm1990_vm9 = vcmp.eq.s32.totalorder %v1988_v3, 0  ;;  %vm1989_vm10 = vcmp.lt.s32.totalorder %v1988_v3, 2 }
 0x350   : > { %v2914_v37 = vadd.s32 4294967294, %v1962_v36 }
 0x352   : > { %vm2915_vm5 = vcmp.lt.s32.totalorder %v2914_v37, 0 }
 0x353   : > { %v1965_v38 = vsel %vm2915_vm5, 0, %v2914_v37 }
 0x354   : > { %v1966_v41 = vsub.s32 32, %v1965_v38  ;;  %v1970_v42 = vsub.s32 4294967266, %v1965_v38  ;;  %v1967_v43 = vshll.u32 %v1958_v30, %v1965_v38 }
 0x356   : > { %v1968_v44 = vshrl.u32 %v1950_v39, %v1966_v41  ;;  %v1971_v45 = vadd.s32 127, %v1970_v42 }
 0x358   : > { %v1969_v47 = vor.u32 %v1968_v44, %v1967_v43  ;;  %v1972_v49 = vshll.u32 %v1971_v45, 23 }
 0x35a   : > { %v1973_v50 = vor.u32 4788187, %v1972_v49  ;;  %v1976_v53 = vcvt.s32.f32 %v1969_v47 }
 0x35c   : > { %v1974_v52 = vand.u32 2147483647, %v1973_v50 }
 0x35e   : > { %v1977_v55 = vmul.f32 %v1976_v53, %v1974_v52 }
 0x360   : > { %v1978_v56 = vxor.u32 2147483648, %v1977_v55 }
 0x362   : > { %v1979_v59 = vsel %vm1896_vm6, %v1978_v56, %v1977_v55 }
 0x363   : > { %v1982_v61 = vsel %vm1895_vm7, %v3518_v22, %v1979_v59 }
 0x364   : > { %3120 = vcosq.f32 %v1982_v61 }
 0x365   : > { %3122 = vsinq.f32 %v1982_v61 }
 0x371   : > { %v3121_v4 = vpop.eup %3120 }
 0x372   : > { %v3123_v5 = vpop.eup %3122  ;;  %v1994_v6 = vxor.u32 2147483648, %v3121_v4 }
 0x373   : > { %v1991_v35 = vxor.u32 2147483648, %v3123_v5 }
 0x374   : > { %v1995_v10 = vsel %vm1993_vm8, %v1994_v6, %v3123_v5 }
 0x375   : > { %v1992_v32 = vsel %vm1990_vm9, %v3121_v4, %v1991_v35 }
 0x376   : > { %v1996_v11 = vsel %vm1989_vm10, %v1992_v32, %v1995_v10 }
 0x377   : > { %v1997_v12 = vsel %vm1986_vm11, nan, %v1996_v11 }
 0x378   : > { %3017 = vmatprep.subr.mxu1 %v1997_v12 }
 0x379   : > { %3018 = vmatpush3.msra.mxu1 %v1997_v12 }
 0x37a   : > { %3019 = vmatprep.subr.mxu1 %v1683_v25 }
 0x37b   : > { %3020 = vmatpush3.msra.mxu1 %v1683_v25 }
 0x37c   : > { %3021 = vmatprep.subr.mxu1 %v1664_v13 }
 0x37d   : > { %3022 = vmatpush3.msra.mxu1 %v1664_v13  ;;  %v3593_v13 = vld [vmem:[#allocation2] sm:$0xff] }
 0x37e   : > { %3024 = vmatmul.mubr.msk.f32.vlgmr.msra.gmra.mxu1 %vm1011_vm2, %v2127_v15 }
 0x37f   : > { %3026 = vmatprep.mubr.msk.f32.mxu1 %vm1011_vm2, %v2128_v14 }
 0x382   : > { %3027 = vmatmul.mubr.msk.f32.gmra.mxu1 %vm1011_vm2, %v2129_v26 }
 0x43e   : > { %v3565_v22 = vpop.f32.mrf.mxu1 }
 0x440   : > { %v3567_v16 = vpop.f32.mrf.mxu1 }
 0x442   : > { %v3028_v33 = vpop.f32.mrf.mxu1 }
 0x443   : > { %v2248_v19 = vadd.f32 %v3028_v33, %v2152_v27 }
 0x444   : > { %v2242_v21 = vpop.f32.mrf.mxu1 }
 0x445   : > { %v2254_v23 = vmul.f32 %v2248_v19, %v2248_v19  ;;  %v3569_v24 = vadd.f32 %v2242_v21, %v2147_v20 }
 0x447   : > { %v2674_v28 = vmul.f32 -200.0, %v2254_v23  ;;  %v2466_v29 = vand.u32 2139095040, %v3569_v24  ;;  %v2463_v36 = vand.u32 2147483647, %v3569_v24  ;;  %vm2465_vm5 = vcmp.lt.s32.totalorder %v3569_v24, 0 }
 0x448   : > { %vm2555_vm10 = vweird.f32 %v3569_v24 }
 0x449   : > { %v2681_v30 = vmul.f32 1.442695, %v2674_v28  ;;  %v2467_v31 = vshrl.u32 %v2466_v29, 23  ;;  %v2470_v39 = vand.u32 8388607, %v2463_v36 }
 0x44a   : > { %vm2464_vm6 = vcmp.le.f32.partialorder %v2463_v36, 0.7853982 }
 0x44b   : > { %3124 = vpow2.f32 %v2681_v30  ;;  %v2932_v34 = vadd.s32 4294967169, %v2467_v31  ;;  %v2471_v58 = vor.u32 8388608, %v2470_v39 }
 0x44d   : > { %v2473_v1 = vadd.s32 1, %v2932_v34  ;;  %v2511_v35 = vshll.u32 %v2471_v58, 8 }
 0x44f   : > { %vm2474_vm13 = vcmp.gt.s32.totalorder %v2473_v1, 0 }
 0x450   : > { %v2475_v37 = vsel %vm2474_vm13, %v2473_v1, 0 }
 0x451   : > { %v2477_v38 = vand.u32 31, %v2475_v37  ;;  %v2476_v42 = vshrl.u32 %v2475_v37, 5 }
 0x453   : > { %v2478_v41 = vsub.s32 32, %v2477_v38  ;;  %v2480_v43 = vshll.u32 %v3195_v46, %v2477_v38  ;;  %v2483_v44 = vshll.u32 %v3196_v48, %v2477_v38  ;;  %v2486_v49 = vshll.u32 %v3197_v51, %v2477_v38 }
 0x454   : > { %v2489_v52 = vshll.u32 %v3198_v54, %v2477_v38  ;;  %v2492_v55 = vshll.u32 %v3199_v57, %v2477_v38  ;;  %vm2495_vm14 = vcmp.lt.s32.totalorder %v2476_v42, 1  ;;  %vm2498_vm15 = vcmp.lt.s32.totalorder %v2476_v42, 4 }
 0x455   : > { %v2481_v45 = vshrl.u32 %v3196_v48, %v2478_v41  ;;  %v2484_v47 = vshrl.u32 %v3197_v51, %v2478_v41  ;;  %v2487_v50 = vshrl.u32 %v3198_v54, %v2478_v41  ;;  %v2490_v53 = vshrl.u32 %v3199_v57, %v2478_v41 }
 0x456   : > { %v2493_v56 = vshrl.u32 %v3200_v60, %v2478_v41  ;;  %v2479_v51 = vshrl.u32 %v3195_v46, %v2478_v41  ;;  %vm2497_vm0 = vcmp.lt.s32.totalorder %v2476_v42, 3  ;;  %vm2496_vm1 = vcmp.lt.s32.totalorder %v2476_v42, 2 }
 0x457   : > { %v2482_v59 = vor.u32 %v2481_v45, %v2480_v43  ;;  %v2485_v61 = vor.u32 %v2484_v47, %v2483_v44  ;;  %v2488_v63 = vor.u32 %v2487_v50, %v2486_v49  ;;  %v2491_v48 = vor.u32 %v2490_v53, %v2489_v52 }
 0x458   : > { %v3125_v0 = vpop.eup %3124  ;;  %v2494_v2 = vor.u32 %v2493_v56, %v2492_v55 }
 0x459   : > { %v2500_v3 = vsel %vm2498_vm15, %v2488_v63, 2102212464  ;;  %v2503_v4 = vsel %vm2495_vm14, %v2482_v59, %v2485_v61  ;;  %v2507_v54 = vsel %vm2495_vm14, %v2485_v61, %v2488_v63  ;;  %v2504_v5 = vsel %vm2498_vm15, %v2491_v48, 920167782 }
 0x45a   : > { %v2508_v6 = vsel %vm2498_vm15, %v2494_v2, 1326507024  ;;  %v2698_v57 = vadd.f32 %v3125_v0, %v3463_v62  ;;  %v2505_v60 = vsel %vm2497_vm0, %v2488_v63, %v2504_v5  ;;  %v2499_v9 = vsel %vm2495_vm14, %v2479_v51, %v2482_v59  ;;  %v2142_v0 = vpop.permute.xlu0 %2141 }
 0x45b   : > { %v2509_v7 = vsel %vm2497_vm0, %v2491_v48, %v2508_v6  ;;  %v2501_v10 = vsel %vm2497_vm0, %v2485_v61, %v2500_v3  ;;  %v2506_v32 = vsel %vm2496_vm1, %v2503_v4, %v2505_v60  ;;  %v2238_v2 = vadd.f32 %v3565_v22, %v2142_v0  ;;  %v2137_v6 = vpop.permute.xlu1 %2136 }
 0x45c   : > { %v2510_v11 = vsel %vm2496_vm1, %v2507_v54, %v2509_v7  ;;  %3030 = vmatpush3.msra.mxu0 %v2698_v57  ;;  %v3590_v46 = vmul.u32.u64.low %v2511_v35, %v2506_v32  ;;  %v3591_v18 = vmul.u32.u64.high %v2511_v35, %v2506_v32, %v3590_v46  ;;  %v2502_v62 = vsel %vm2496_vm1, %v2499_v9, %v2501_v10 }
 0x45d   : > { %v3587_v12 = vmul.u32.u64.low %v2511_v35, %v2510_v11  ;;  %v3588_v25 = vmul.u32.u64.high %v2511_v35, %v2510_v11, %v3587_v12  ;;  %3031 = vmatprep.subr.mxu0 %v3593_v13  ;;  %v2518_v14 = vmul.u32 %v2511_v35, %v2502_v62  ;;  %v2252_v54 = vmul.f32 %v2238_v2, %v2238_v2 }
 0x45e   : > { %v2521_v15 = vadd.s32 1, %v3591_v18  ;;  %v2233_v60 = vadd.f32 %v3567_v16, %v2137_v6 }
 0x45f   : > { %vm2520_vm3 = vc.u32 %v3588_v25, %v3590_v46  ;;  %v2519_v34 = vadd.s32 %v3590_v46, %v3588_v25  ;;  %v2696_v22 = vadd.f32 %v2252_v54, %v3483_v8  ;;  %v2704_v8 = vpop.permute.xlu0 %2703 }
 0x460   : > { %v2522_v26 = vsel %vm2520_vm3, %v2521_v15, %v3591_v18  ;;  %v2695_v35 = vadd.f32 %v2233_v60, %v3491_v17 }
 0x461   : > { %v2523_v27 = vadd.s32 %v2522_v26, %v2518_v14 }
 0x463   : > { %v2524_v33 = vadd.s32 536870912, %v2523_v27 }
 0x465   : > { %v2525_v19 = vshrl.u32 %v2524_v33, 30 }
 0x467   : > { %v2526_v20 = vshll.u32 %v2525_v19, 30  ;;  %v2549_v52 = vsub.s32 4, %v2525_v19 }
 0x469   : > { %v2527_v21 = vsub.s32 %v2523_v27, %v2526_v20  ;;  %v2550_v56 = vsel %vm2465_vm5, %v2549_v52, %v2525_v19 }
 0x46a   : > { %v2552_v58 = vsel %vm2464_vm6, 0, %v2550_v56 }
 0x46b   : > { %v2529_v23 = vsub.s32 0, %v2527_v21  ;;  %v2556_v59 = vadd.s32 3, %v2552_v58 }
 0x46d   : > { %v2933_v28 = vmin.u32 %v2529_v23, %v2527_v21  ;;  %v2557_v61 = vand.u32 3, %v2556_v59 }
 0x46f   : > { %v2531_v29 = vclz %v2933_v28  ;;  %vm2562_vm7 = vcmp.eq.s32.totalorder %v2557_v61, 2  ;;  %vm2559_vm8 = vcmp.eq.s32.totalorder %v2557_v61, 0  ;;  %vm2558_vm9 = vcmp.lt.s32.totalorder %v2557_v61, 2 }
 0x471   : > { %v2934_v30 = vadd.s32 4294967294, %v2531_v29 }
 0x473   : > { %vm2935_vm4 = vcmp.lt.s32.totalorder %v2934_v30, 0 }
 0x474   : > { %v2534_v31 = vsel %vm2935_vm4, 0, %v2934_v30 }
 0x475   : > { %v2535_v1 = vsub.s32 32, %v2534_v31  ;;  %v2539_v37 = vsub.s32 4294967266, %v2534_v31  ;;  %v2536_v38 = vshll.u32 %v2527_v21, %v2534_v31 }
 0x477   : > { %v2537_v39 = vshrl.u32 %v2519_v34, %v2535_v1  ;;  %v2540_v41 = vadd.s32 127, %v2539_v37 }
 0x479   : > { %v2538_v42 = vor.u32 %v2537_v39, %v2536_v38  ;;  %v2541_v43 = vshll.u32 %v2540_v41, 23 }
 0x47b   : > { %v2542_v44 = vor.u32 4788187, %v2541_v43  ;;  %v2545_v47 = vcvt.s32.f32 %v2538_v42 }
 0x47d   : > { %v2543_v45 = vand.u32 2147483647, %v2542_v44 }
 0x47f   : > { %v2546_v49 = vmul.f32 %v2545_v47, %v2543_v45 }
 0x481   : > { %v2547_v50 = vxor.u32 2147483648, %v2546_v49 }
 0x483   : > { %v2548_v53 = vsel %vm2465_vm5, %v2547_v50, %v2546_v49 }
 0x484   : > { %v2551_v55 = vsel %vm2464_vm6, %v3569_v24, %v2548_v53  ;;  %v2699_v24 = vld [vmem:[%s3665_s9] sm:$0xf] }
 0x485   : > { %3126 = vcosq.f32 %v2551_v55 }
 0x486   : > { %3128 = vsinq.f32 %v2551_v55 }
 0x492   : > { %v3127_v63 = vpop.eup %3126 }
 0x493   : > { %v3129_v48 = vpop.eup %3128  ;;  %v2563_v51 = vxor.u32 2147483648, %v3127_v63 }
 0x494   : > { %v2560_v3 = vxor.u32 2147483648, %v3129_v48 }
 0x495   : > { %v2564_v4 = vsel %vm2562_vm7, %v2563_v51, %v3129_v48 }
 0x496   : > { %v2561_v36 = vsel %vm2559_vm8, %v3127_v63, %v2560_v3 }
 0x497   : > { %v2565_v5 = vsel %vm2558_vm9, %v2561_v36, %v2564_v4 }
 0x498   : > { %v2566_v57 = vsel %vm2555_vm10, nan, %v2565_v5 }
 0x499   : > { %v2697_v7 = vadd.f32 %v2566_v57, %v3486_v40 }
 0x49b   : > { %3032 = vmatpush3.msra.mxu0 %v2697_v7 }
 0x49c   : > { %3033 = vmatprep.subr.mxu0 %v3593_v13 }
 0x49d   : > { %3034 = vmatpush3.msra.mxu0 %v2696_v22 }
 0x49e   : > { %3035 = vmatprep.subr.mxu0 %v3593_v13 }
 0x49f   : > { %3036 = vmatpush3.msra.mxu0 %v2695_v35 }
 0x4a0   : > { %3038 = vmatmul.mubr.msk.f32.vlgmr.msra.gmra.mxu0 %vm1011_vm2, %v2699_v24 }
 0x560   : > { %v2775_v40 = vpop.f32.mrf.mxu0 }
 0x561   : > { %v2776_v16 = vadd.f32 %v2775_v40, %v2704_v8 }
 0x562   : > { %v3039_v17 = vpop.f32.mrf.mxu0 }
 0x563   : > { %2779 = vst [vmem:[%s377_s14] sm:$0xf] %v2776_v16 }
 0x564   : > { %3144 = shalt.err (!%p3141_p3)
}
 0x565   : > { %s3145_s12 = scalar_lea.hbm %s3621_s15, 64  ;;  %s3149_s14 = scalar_lea.hbm %s3667_s11, 128 }
 0x566   : > { %p3146_p4 = scmp.ne.s32.totalorder %s3621_s15, %s3145_s12  ;;  %p3150_p9 = scmp.lt.s32.totalorder %s3621_s15, %s3667_s11 }
 0x567   : > { %p3151_p10 = scmp.lt.s32.totalorder %s3149_s14, %s3145_s12 }
 0x568   : > { %p3147_p7 = pnand %p3146_p4, %p3301_p5 }
 0x569   : > { %p3152_p11 = por %p3151_p10, %p3150_p9 }
 0x56a   : > { %p3148_p8 = pneg %p3147_p7 }
 0x56c   : > { %p3153_p12 = pnand %p3152_p11, %p3148_p8 }
 0x56e   : > { %3156 = shalt.err (!%p3153_p12)
}
 0x56f   : > { %3056 = dma.vmem_to_hbm [thread:$0]  (%p3301_p5), %s2795_s16, 64, %s3621_s15, %s2781_s26  }
 0x570 PF: > { %p3062_p13 = scmp.ge.s32.totalorder %s3191_s20, 2  ;;  %s2806_s19 = sand.u32 1, %s3179_s17  }
 0x571   : > { %s2807_s21 = scalar_lea.sflag [#allocation4], %s2806_s19 }
 0x572   : > { %p3059_p0 = pnand %p3062_p13, %p3305_p6 }
 0x574   : > { %p3060_p1 = pneg %p3059_p0 }
 0x576   : > { %3174 = dma.done.wait (%p3060_p1), %s2807_s21, 64  }
 0x577   : > { %3176 = vsyncadd (%p3060_p1), %s2807_s21, 4294967232  ;;  %s3673_s25 = sld [smem:[#allocation6_spill]]  ;;  %p21_p2 = scmp.ge.s32.totalorder %s3288_s23, 4  }
 0x578   : > { %s3674_s19 = sld [smem:[#allocation7_spill]]  ;;  %s3675_s17 = smov %s3183_s18 }
 0x579   : > { %s3677_s20 = smov %s3288_s23  ;;  %23 = sbr.rel (!%p21_p2) target bundleno = 3 (0x3), region = 99 }
 0x57d   : > { %s3676_s18 = smov %s3673_s25 }
 0x57e   :  { %2812 = vsyncpa [#allocation4], 1 }
 0x57f   :  { %2814 = vsyncpa [#allocation4 + $0x1], 1 }

</bundles_post_ra>
